<compile_context>
chip_gen: v6e
topology: v6e:2x2x1
jax: 0.10.0
libtpu: 0.0.40
codegen_flags: <defaults>
</compile_context>

<pallas_src>
import math
from functools import partial

import jax
import jax.numpy as jnp
from jax import lax
from jax.experimental import pallas as pl
from jax.experimental.pallas import tpu as pltpu


# ------------------------------- helpers ------------------------------------

def _tile(dim, target):
    """Pick a tile size <= target that divides dim (falls back to full dim)."""
    if dim <= target:
        return dim
    for t in (target, target // 2, target // 4, 128, 8):
        if t >= 1 and dim % t == 0:
            return t
    return dim


# --------------------------- tiled GEMM kernels ------------------------------

def _matmul_bias_kernel(x_ref, w_ref, b_ref, o_ref, acc_ref):
    @pl.when(pl.program_id(2) == 0)
    def _():
        acc_ref[...] = jnp.zeros_like(acc_ref)

    acc_ref[...] += jnp.dot(x_ref[...], w_ref[...],
                            preferred_element_type=jnp.float32)

    @pl.when(pl.program_id(2) == pl.num_programs(2) - 1)
    def _():
        o_ref[...] = (acc_ref[...] + b_ref[...]).astype(o_ref.dtype)


def _matmul_kernel(x_ref, w_ref, o_ref, acc_ref):
    @pl.when(pl.program_id(2) == 0)
    def _():
        acc_ref[...] = jnp.zeros_like(acc_ref)

    acc_ref[...] += jnp.dot(x_ref[...], w_ref[...],
                            preferred_element_type=jnp.float32)

    @pl.when(pl.program_id(2) == pl.num_programs(2) - 1)
    def _():
        o_ref[...] = acc_ref[...].astype(o_ref.dtype)


def linear(x, w, b=None, *, out_dtype=jnp.float32, tm=256, tn=256, tk=512):
    """Tiled, bf16, MXU matmul: x @ w (+ b). Accumulates in f32."""
    m, kdim = x.shape
    _, n = w.shape
    tm = _tile(m, tm)
    tn = _tile(n, tn)
    tk = _tile(kdim, tk)
    k_steps = kdim // tk

    x = x.astype(jnp.bfloat16)
    w = w.astype(jnp.bfloat16)

    # Deeper buffering on the streamed weight tiles only when there are enough
    # K steps to pipeline over (keeps the tiny demo shapes on the default path).
    w_spec_kwargs = {}
    if k_steps >= 3:
        w_spec_kwargs["pipeline_mode"] = pl.Buffered(3)
    w_spec = pl.BlockSpec((tk, tn), lambda i, j, k: (k, j), **w_spec_kwargs)

    in_specs = [pl.BlockSpec((tm, tk), lambda i, j, k: (i, k)), w_spec]
    args = [x, w]
    if b is not None:
        in_specs.append(pl.BlockSpec((1, tn), lambda i, j, k: (0, j)))
        args.append(b.reshape(1, n).astype(jnp.float32))
        kernel = _matmul_bias_kernel
    else:
        kernel = _matmul_kernel

    cost = pl.CostEstimate(
        flops=2 * m * n * kdim,
        transcendentals=0,
        bytes_accessed=2 * (m * kdim + kdim * n) + 4 * m * n,
    )

    return pl.pallas_call(
        kernel,
        out_shape=jax.ShapeDtypeStruct((m, n), out_dtype),
        grid=(m // tm, n // tn, k_steps),
        in_specs=in_specs,
        out_specs=pl.BlockSpec((tm, tn), lambda i, j, k: (i, j)),
        scratch_shapes=[pltpu.VMEM((tm, tn), jnp.float32)],
        compiler_params=pltpu.CompilerParams(
            dimension_semantics=("parallel", "parallel", "arbitrary")),
        cost_estimate=cost,
    )(*args)


# ------------------------------- RoPE kernel ---------------------------------

def _rope_kernel(q_ref, k_ref, cos_ref, sin_ref, qo_ref, ko_ref, *, half):
    # q_ref/k_ref: (1, ts, D) slices of the c_attn output for one head.
    # cos/sin: (ts, D); sin already has the rotate_half sign folded in, so
    #   rotate_half(t) * sin == roll(t, half) * sin_folded  (XLU roll, no copies)
    cos = cos_ref[...]
    sin = sin_ref[...]
    q = q_ref[0].astype(jnp.float32)
    k = k_ref[0].astype(jnp.float32)
    qo_ref[0] = (q * cos + pltpu.roll(q, half, axis=1) * sin).astype(qo_ref.dtype)
    ko_ref[0] = (k * cos + pltpu.roll(k, half, axis=1) * sin).astype(ko_ref.dtype)


def rotary_cos_sin(seq_len, dim, base=10000.0, ntk_alpha=1.0):
    """RotaryEmbedding cache (cos, sign-folded sin), matching the PyTorch module."""
    base = base * ntk_alpha ** (dim / (dim - 2))
    inv_freq = 1.0 / (base ** (jnp.arange(0, dim, 2, dtype=jnp.float32) / dim))
    pos = jnp.arange(seq_len, dtype=jnp.float32)
    freqs = jnp.outer(pos, inv_freq)                 # (S, dim/2)
    emb = jnp.concatenate([freqs, freqs], axis=-1)   # (S, dim)
    half = dim // 2
    sign = jnp.concatenate([-jnp.ones((half,), jnp.float32),
                            jnp.ones((half,), jnp.float32)])
    return jnp.cos(emb), jnp.sin(emb) * sign


def apply_rope(mixed, cos, sin_folded, num_heads, head_dim, hidden, *, ts_target=512):
    """Rotate the q and k portions of the fused c_attn output once (hoisted)."""
    b, s, _ = mixed.shape
    ts = _tile(s, ts_target)
    half = head_dim // 2
    kernel = partial(_rope_kernel, half=half)
    return pl.pallas_call(
        kernel,
        out_shape=(jax.ShapeDtypeStruct((b, s, hidden), jnp.bfloat16),
                   jax.ShapeDtypeStruct((b, s, hidden), jnp.bfloat16)),
        grid=(b, num_heads, s // ts),
        in_specs=[
            # q head slice of mixed: columns [h*D, (h+1)*D)
            pl.BlockSpec((1, ts, head_dim), lambda bi, hi, si: (bi, si, hi)),
            # k head slice of mixed: columns [hidden + h*D, ...)
            pl.BlockSpec((1, ts, head_dim),
                         lambda bi, hi, si: (bi, si, num_heads + hi)),
            pl.BlockSpec((ts, head_dim), lambda bi, hi, si: (si, 0)),
            pl.BlockSpec((ts, head_dim), lambda bi, hi, si: (si, 0)),
        ],
        out_specs=[
            pl.BlockSpec((1, ts, head_dim), lambda bi, hi, si: (bi, si, hi)),
            pl.BlockSpec((1, ts, head_dim), lambda bi, hi, si: (bi, si, hi)),
        ],
        compiler_params=pltpu.CompilerParams(
            dimension_semantics=("parallel", "parallel", "parallel")),
    )(mixed, mixed, cos, sin_folded)


# --------------------------- flash attention kernel ---------------------------

def _flash_attn_kernel(q_ref, k_ref, v_ref, o_ref, m_sc, l_sc, acc_sc,
                       *, sm_scale, tq, tk):
    qi = pl.program_id(2)
    ki = pl.program_id(3)

    @pl.when(ki == 0)
    def _():
        m_sc[...] = jnp.full_like(m_sc, -jnp.inf)
        l_sc[...] = jnp.zeros_like(l_sc)
        acc_sc[...] = jnp.zeros_like(acc_sc)

    # Skip kv tiles entirely above the causal diagonal (tq == tk, so any
    # processed tile has at least one unmasked key per query row).
    @pl.when(ki * tk <= qi * tq + (tq - 1))
    def _():
        q = q_ref[0]                              # (tq, D) bf16
        k = k_ref[0]                              # (tk, D) bf16
        v = v_ref[0].astype(jnp.bfloat16)         # (tk, D)

        # Q @ K^T without materializing a transpose of K.
        s = lax.dot_general(q, k, (((1,), (1,)), ((), ())),
                            preferred_element_type=jnp.float32) * sm_scale

        row = qi * tq + lax.broadcasted_iota(jnp.int32, (tq, tk), 0)
        col = ki * tk + lax.broadcasted_iota(jnp.int32, (tq, tk), 1)
        s = jnp.where(col <= row, s, jnp.finfo(jnp.float32).min)

        m_prev = m_sc[...]
        m_new = jnp.maximum(m_prev, jnp.max(s, axis=-1, keepdims=True))
        alpha = jnp.exp(m_prev - m_new)
        p = jnp.exp(s - m_new)

        l_sc[...] = alpha * l_sc[...] + jnp.sum(p, axis=-1, keepdims=True)
        acc_sc[...] = alpha * acc_sc[...] + jnp.dot(
            p.astype(jnp.bfloat16), v, preferred_element_type=jnp.float32)
        m_sc[...] = m_new

    @pl.when(ki == pl.num_programs(3) - 1)
    def _():
        # TODO(synk): attn_dropout skipped (eval mode / attn_pdrop = 0.0)
        inv_l = pl.reciprocal(l_sc[...], approx=True)
        o_ref[0] = (acc_sc[...] * inv_l).astype(o_ref.dtype)


def flash_attention(q_rot, k_rot, mixed, num_heads, head_dim, hidden, *, tq_target=256):
    """Causal flash attention.

    q_rot/k_rot: (B, S, hidden) rotated q/k (bf16), heads laid out along the
    last dim.  v is read directly out of `mixed` (B, S, 3*hidden) at column
    block 2*H + h.  Output context is written directly in (B, S, hidden).
    """
    b, s, _ = q_rot.shape
    tq = _tile(s, tq_target)
    tk = tq
    sm_scale = 1.0 / math.sqrt(head_dim)
    kernel = partial(_flash_attn_kernel, sm_scale=sm_scale, tq=tq, tk=tk)
    return pl.pallas_call(
        kernel,
        out_shape=jax.ShapeDtypeStruct((b, s, hidden), jnp.bfloat16),
        grid=(b, num_heads, s // tq, s // tk),
        in_specs=[
            pl.BlockSpec((1, tq, head_dim),
                         lambda bi, hi, qi, ki: (bi, qi, hi)),
            pl.BlockSpec((1, tk, head_dim),
                         lambda bi, hi, qi, ki: (bi, ki, hi)),
            pl.BlockSpec((1, tk, head_dim),
                         lambda bi, hi, qi, ki: (bi, ki, 2 * num_heads + hi)),
        ],
        out_specs=pl.BlockSpec((1, tq, head_dim),
                               lambda bi, hi, qi, ki: (bi, qi, hi)),
        scratch_shapes=[
            pltpu.VMEM((tq, 1), jnp.float32),          # running max
            pltpu.VMEM((tq, 1), jnp.float32),          # running denom
            pltpu.VMEM((tq, head_dim), jnp.float32),   # accumulator
        ],
        compiler_params=pltpu.CompilerParams(
            dimension_semantics=("parallel", "parallel", "parallel", "arbitrary")),
    )(q_rot, k_rot, mixed)


# ------------------------------ forward pass ---------------------------------

def qwen_attention_forward(hidden_states, params, num_heads):
    """QWenAttention.forward (no layer_past, no masks, no cache, eval mode)."""
    b, s, hidden = hidden_states.shape
    head_dim = hidden // num_heads

    # c_attn: (B*S, hidden) @ (hidden, 3*hidden) + bias  (tiled bf16 GEMM)
    x2d = hidden_states.reshape(b * s, hidden)
    mixed = linear(x2d, params["c_attn_w"], params["c_attn_b"],
                   out_dtype=jnp.bfloat16)
    mixed = mixed.reshape(b, s, 3 * hidden)          # [q | k | v] per head

    # Rotary embedding applied once to q and k (hoisted out of the kv loop).
    cos, sin_folded = rotary_cos_sin(s, head_dim)    # (S, D) each
    q_rot, k_rot = apply_rope(mixed, cos, sin_folded, num_heads, head_dim, hidden)

    # Causal flash attention; context written directly in (B, S, hidden).
    ctx = flash_attention(q_rot, k_rot, mixed, num_heads, head_dim, hidden)

    # c_proj (no bias since config.no_bias = True)
    out = linear(ctx.reshape(b * s, hidden), params["c_proj_w"],
                 out_dtype=jnp.float32).reshape(b, s, hidden)
    present = None  # use_cache = False
    return out, present


# ------------------------- pure-JAX reference (check) ------------------------

def _reference_forward(hidden_states, params, num_heads):
    b, s, hidden = hidden_states.shape
    d = hidden // num_heads
    x = hidden_states.astype(jnp.float32)
    mixed = x @ params["c_attn_w"] + params["c_attn_b"]
    q, k, v = jnp.split(mixed, 3, axis=-1)

    def heads(t):
        return t.reshape(b, s, num_heads, d).transpose(0, 2, 1, 3)

    q, k, v = heads(q), heads(k), heads(v)

    inv_freq = 1.0 / (10000.0 ** (jnp.arange(0, d, 2, dtype=jnp.float32) / d))
    freqs = jnp.outer(jnp.arange(s, dtype=jnp.float32), inv_freq)
    emb = jnp.concatenate([freqs, freqs], axis=-1)
    cos, sin = jnp.cos(emb), jnp.sin(emb)

    def rot_half(t):
        h = d // 2
        return jnp.concatenate([-t[..., h:], t[..., :h]], axis=-1)

    q = q * cos + rot_half(q) * sin
    k = k * cos + rot_half(k) * sin

    scores = jnp.einsum("bhqd,bhkd->bhqk", q, k) / jnp.sqrt(jnp.float32(d))
    mask = jnp.tril(jnp.ones((s, s), bool))
    scores = jnp.where(mask, scores, jnp.finfo(jnp.float32).min)
    p = jax.nn.softmax(scores, axis=-1)
    ctx = jnp.einsum("bhqk,bhkd->bhqd", p, v)
    ctx = ctx.transpose(0, 2, 1, 3).reshape(b, s, hidden)
    return ctx @ params["c_proj_w"]


# ---------------------------------- main -------------------------------------

if __name__ == "__main__":
    # Small shapes; head_dim = 128 matches real QWen heads and keeps per-head
    # BlockSpec column blocks lane-aligned.
    B, S, NUM_HEADS, HEAD_DIM = 2, 16, 2, 128
    HIDDEN = NUM_HEADS * HEAD_DIM

    key = jax.random.PRNGKey(0)
    k_x, k_w1, k_b1, k_w2 = jax.random.split(key, 4)

    hidden_states = jax.random.normal(k_x, (B, S, HIDDEN), dtype=jnp.float32)

    params = {
        # weights stored as (in_features, out_features) for x @ w
        "c_attn_w": 0.05 * jax.random.normal(k_w1, (HIDDEN, 3 * HIDDEN), jnp.float32),
        "c_attn_b": 0.01 * jax.random.normal(k_b1, (3 * HIDDEN,), jnp.float32),
        "c_proj_w": 0.05 * jax.random.normal(k_w2, (HIDDEN, HIDDEN), jnp.float32),
    }

    out, present = qwen_attention_forward(hidden_states, params, NUM_HEADS)
    out = jax.block_until_ready(out)

    assert out.shape == (B, S, HIDDEN)
    assert bool(jnp.all(jnp.isfinite(out)))

    # Loose numerical check vs a pure-JAX f32 reference (kernel runs bf16 MXU).
    ref = _reference_forward(hidden_states, params, NUM_HEADS)
    max_err = float(jnp.max(jnp.abs(out - ref)))
    assert max_err < 0.1, f"max abs error vs reference too large: {max_err}"

    print("KERNEL_OK")
</pallas_src>

<mosaic_0001>
module attributes {stable_mosaic.version = 11 : i64} {
  func.func @_matmul_bias_kernel(%arg0: i32, %arg1: i32, %arg2: i32, %arg3: memref<32x256xbf16, #tpu.memory_space<vmem>>, %arg4: memref<256x256xbf16, #tpu.memory_space<vmem>>, %arg5: memref<1x256xf32, #tpu.memory_space<vmem>>, %arg6: memref<32x256xbf16, #tpu.memory_space<vmem>>, %arg7: memref<32x256xf32, #tpu.memory_space<vmem>>) attributes {dimension_semantics = [#tpu.dimension_semantics<parallel>, #tpu.dimension_semantics<parallel>, #tpu.dimension_semantics<arbitrary>], iteration_bounds = array<i64: 1, 3, 1>, scalar_prefetch = 0 : i64, scratch_operands = 1 : i64, tpu.core_type = #tpu.core_type<tc>, window_params = [{transform_indices = @transform_0, window_bounds = array<i64: 32, 256>}, {transform_indices = @transform_1, window_bounds = array<i64: 256, 256>}, {transform_indices = @transform_2, window_bounds = array<i64: 1, 256>}, {transform_indices = @transform_3, window_bounds = array<i64: 32, 256>}]} {
    %c0_i32 = arith.constant 0 : i32
    %0 = arith.cmpi eq, %arg2, %c0_i32 : i32
    %1 = arith.extui %0 : i1 to i32
    %c0_i32_0 = arith.constant 0 : i32
    %2 = arith.cmpi ne, %1, %c0_i32_0 : i32
    scf.if %2 {
      %cst_10 = arith.constant 0.000000e+00 : f32
      %12 = vector.broadcast %cst_10 : f32 to vector<32x256xf32>
      %c0_11 = arith.constant 0 : index
      %c0_12 = arith.constant 0 : index
      %13 = vector.load %arg7[%c0_11, %c0_12] : memref<32x256xf32, #tpu.memory_space<vmem>>, vector<32x256xf32>
      tpu.vector_store %arg7[%c0_11, %c0_12], %12 {strides = array<i32>} : memref<32x256xf32, #tpu.memory_space<vmem>>, vector<32x256xf32>,
    } else {
    }
    %c0 = arith.constant 0 : index
    %c0_1 = arith.constant 0 : index
    %3 = vector.load %arg7[%c0, %c0_1] : memref<32x256xf32, #tpu.memory_space<vmem>>, vector<32x256xf32>
    %c0_2 = arith.constant 0 : index
    %c0_3 = arith.constant 0 : index
    %4 = vector.load %arg3[%c0_2, %c0_3] : memref<32x256xbf16, #tpu.memory_space<vmem>>, vector<32x256xbf16>
    %c0_4 = arith.constant 0 : index
    %c0_5 = arith.constant 0 : index
    %5 = vector.load %arg4[%c0_4, %c0_5] : memref<256x256xbf16, #tpu.memory_space<vmem>>, vector<256x256xbf16>
    %cst = arith.constant dense<0.000000e+00> : vector<32x256xf32>
    %6 = tpu.matmul %4, %5, %cst {dimension_numbers = #tpu.dot_dimension_numbers<[1], [0], [0], [1], [0, 0, 1, 1], [], []>} : vector<32x256xbf16>, vector<256x256xbf16>, vector<32x256xf32> -> vector<32x256xf32>
    %7 = arith.addf %3, %6 : vector<32x256xf32>
    %c0_6 = arith.constant 0 : index
    %c0_7 = arith.constant 0 : index
    %8 = vector.load %arg7[%c0_6, %c0_7] : memref<32x256xf32, #tpu.memory_space<vmem>>, vector<32x256xf32>
    tpu.vector_store %arg7[%c0_6, %c0_7], %7 {strides = array<i32>} : memref<32x256xf32, #tpu.memory_space<vmem>>, vector<32x256xf32>,
    %c0_i32_8 = arith.constant 0 : i32
    %9 = arith.cmpi eq, %arg2, %c0_i32_8 : i32
    %10 = arith.extui %9 : i1 to i32
    %c0_i32_9 = arith.constant 0 : i32
    %11 = arith.cmpi ne, %10, %c0_i32_9 : i32
    scf.if %11 {
      %c0_10 = arith.constant 0 : index
      %c0_11 = arith.constant 0 : index
      %12 = vector.load %arg7[%c0_10, %c0_11] : memref<32x256xf32, #tpu.memory_space<vmem>>, vector<32x256xf32>
      %c0_12 = arith.constant 0 : index
      %c0_13 = arith.constant 0 : index
      %13 = vector.load %arg5[%c0_12, %c0_13] : memref<1x256xf32, #tpu.memory_space<vmem>>, vector<1x256xf32>
      %14 = vector.broadcast %13 : vector<1x256xf32> to vector<32x256xf32>
      %15 = arith.addf %12, %14 : vector<32x256xf32>
      %16 = arith.truncf %15 : vector<32x256xf32> to vector<32x256xbf16>
      %c0_14 = arith.constant 0 : index
      %c0_15 = arith.constant 0 : index
      %17 = vector.load %arg6[%c0_14, %c0_15] : memref<32x256xbf16, #tpu.memory_space<vmem>>, vector<32x256xbf16>
      tpu.vector_store %arg6[%c0_14, %c0_15], %16 {strides = array<i32>} : memref<32x256xbf16, #tpu.memory_space<vmem>>, vector<32x256xbf16>,
    } else {
    }
    return
  }
  func.func @transform_0(%arg0: i32, %arg1: i32, %arg2: i32) -> (i32, i32) {
    %c0_i32 = arith.constant 0 : i32
    return %arg0, %arg2 : i32, i32
  }
  func.func @transform_1(%arg0: i32, %arg1: i32, %arg2: i32) -> (i32, i32) {
    %c0_i32 = arith.constant 0 : i32
    return %arg2, %arg1 : i32, i32
  }
  func.func @transform_2(%arg0: i32, %arg1: i32, %arg2: i32) -> (i32, i32) {
    %c0_i32 = arith.constant 0 : i32
    %c0_i32_0 = arith.constant 0 : i32
    return %c0_i32, %arg1 : i32, i32
  }
  func.func @transform_3(%arg0: i32, %arg1: i32, %arg2: i32) -> (i32, i32) {
    %c0_i32 = arith.constant 0 : i32
    return %arg0, %arg1 : i32, i32
  }
}

</mosaic_0001>

<bundles_post_ra>
// kernel: tpu_custom_call.1
= control target key start
LH: loop header
LB: loop body
LE: loop exit
PB: predicated region body
PF: predicated region fallthrough
CT: control target
= control target key end

     0   :  { %s1477_s0 = inlined_call_operand.hbm [shape: bf16[32,256], index: 0, kind: input, shape index: {}]   ;;  %s1478_s1 = inlined_call_operand.hbm [shape: bf16[256,768], index: 1, kind: input, shape index: {}]   ;;  %s1479_s2 = inlined_call_operand.hbm [shape: f32[1,768], index: 2, kind: input, shape index: {}]   ;;  %s1480_s3 = inlined_call_operand.hbm [shape: bf16[32,768], index: 3, kind: output, shape index: {}]  }
   0x1   :  { %1486 = sst [smem:[#allocation13_spill]] %s1478_s1 }
   0x2   :  { %8 = vsyncpa [#allocation4], 0 }
   0x3   :  { %9 = vsyncpa [#allocation7], 0 }
   0x4   :  { %11 = vsyncpa [#allocation7 + $0x1], 0 }
   0x5   :  { %12 = vsyncpa [#allocation5], 0 }
   0x6   :  { %14 = vsyncpa [#allocation5 + $0x1], 0  ;;  %s1229_s12 = smov 0   ;;  %s1231_s13 = smov 0  }
   0x7   :  { %s1233_s14 = smov 0   ;;  %s1235_s15 = smov 0  }
   0x8   :  { %s1237_s16 = smov 0   ;;  %s1239_s17 = smov 0  }
   0x9 LB: > { %s35_s18 = sadd.s32 1, %s1193_s16  ;;  %s76_s19 = sadd.s32 1, %s1185_s14  ;;  %s1197_s17 = sphi %s1239_s17, %s20_s17   ;;  %s1193_s16 = sphi %s1237_s16, %s1506_s16   ;;  %s1189_s15 = sphi %s1235_s15, %s1505_s15   ;;  %s1185_s14 = sphi %s1233_s14, %s1504_s14   ;;  %s1181_s13 = sphi %s1231_s13, %s1503_s13   ;;  %s1177_s12 = sphi %s1229_s12, %s1502_s12  }
   0xa   : > { %p37_p0 = scmp.ge.s32.totalorder %s35_s18, 3  ;;  %p83_p1 = scmp.ne.s32.totalorder %s1185_s14, %s1181_s13 }
   0xb   : > { %p84_p2 = scmp.eq.s32.totalorder %s1197_s17, 0  ;;  %p919_p5 = scmp.lt.s32.totalorder %s1197_s17, 3 }
   0xc   : > { %s1508_s18 = smov (%p37_p0, %s35_s18), 0  ;;  %s186_s22 = sand.u32 1, %s1197_s17  }
   0xd   : > { %p1269_p3 = por %p84_p2, %p83_p1  ;;  %s72_s21 = ssub.s32 %s1193_s16, %s1508_s18 }
   0xe   : > { %p74_p4 = scmp.eq.s32.totalorder %s72_s21, 0  ;;  %s188_s23 = sand.u32 1, %s1185_s14  }
   0xf   : > { %s798_s25 = sshll.u32 %s188_s23, 8  ;;  %s854_s26 = sshll.u32 %s1193_s16, 7 }
  0x10   : > { %s1279_s24 = scalar_select %p74_p4, %s1185_s14, %s76_s19  }
  0x11   : > { %s1488_s1 = sld [smem:[#allocation13_spill]]  ;;  %s190_s30 = scalar_lea.vmem [#allocation6], %s798_s25 }
  0x12   : > { %s200_s4 = sshll.u32 %s190_s30, 4  ;;  %p1289_p6 = pnand %p919_p5, %p1269_p3  ;;  %s201_s4 = int_to_ptr.vmem [resolvable:$true] %s200_s4 }
  0x13   : > { %s1293_s6 = scalar_lea.sflag [#allocation7], %s186_s22  ;;  %s1044_s7 = scalar_lea.vmem %s201_s4, 4096 }
  0x14   : > { %p1033_p7 = pneg %p1289_p6  ;;  %p1045_p8 = scmp.ne.s32.totalorder %s201_s4, %s1044_s7 }
  0x15   : > { %s1199_s8 = smov [#allocation6]  }
  0x16   : > { %p1047_p9 = pnand %p1045_p8, %p1033_p7  ;;  %s1049_s9 = sshll.u32 %s1199_s8, 4  ;;  %s1050_s9 = int_to_ptr.vmem [resolvable:$false] %s1049_s9 }
  0x17   : > { %s199_s29 = scalar_lea.hbm %s1488_s1, %s854_s26  ;;  %s1051_s10 = scalar_lea.vmem %s1050_s9, 8192 }
  0x18   : > { %p1048_p10 = pneg %p1047_p9  ;;  %p1052_p11 = scmp.lt.s32.totalorder %s201_s4, %s1050_s9 }
  0x19   : > { %p1053_p12 = scmp.lt.s32.totalorder %s1051_s10, %s1044_s7 }
  0x1b   : > { %p1054_p13 = por %p1053_p12, %p1052_p11 }
  0x1d   : > { %p1055_p0 = pnand %p1054_p13, %p1048_p10 }
  0x1f   : > { %1058 = shalt.err (!%p1055_p0)
}
  0x20   : > { %s1200_s11 = smov 384   ;;  %s1481_s19 = smov 128  }
  0x21   : > { %s1482_s20 = smov 8   ;;  %s1306_s21 = sadd.s32 4294967295, %s1197_s17  }
  0x22   : > { %910 = dma.hbm_to_vmem [thread:$0]  (!%p1289_p6), %s199_s29, 4096, %s201_s4, %s1293_s6, %s1200_s11, %s1481_s19, %s1482_s20  }
  0x23   : > { %s794_s22 = sadd.s32 4294967294, %s1197_s17   ;;  %p89_p2 = scmp.ne.s32.totalorder %s1181_s13, %s1177_s12 }
  0x24   : > { %p1484_p3 = scmp.eq.s32.totalorder %s1306_s21, 0  ;;  %p141_p4 = scmp.eq.s32.totalorder %s1306_s21, 2 }
  0x25   : > { %p147_p5 = scmp.eq.s32.totalorder %s794_s22, 2  ;;  %p795_p9 = scmp.ge.s32.totalorder %s1197_s17, 1 }
  0x26   : > { %p1315_p8 = por %p1484_p3, %p89_p2  ;;  %p1323_p10 = por %p141_p4, %p83_p1 }
  0x27   : > { %p1327_p11 = por %p147_p5, %p89_p2  ;;  %p154_p12 = scmp.lt.s32.totalorder %s1197_s17, 4 }
  0x28   : > { %s1490_s25 = scalar_select %p1315_p8, 1, 0 }
  0x29   : > { %s1491_s26 = scalar_select %p1323_p10, 1, 0 }
  0x2a   : > { %s1492_s27 = scalar_select %p1327_p11, 1, 0 }
  0x2b   : > { %s801_s28 = sshll.u32 %s188_s23, 1  ;;  %p1334_p13 = pnand %p795_p9, %p154_p12 }
  0x2c   : > { %s1203_s30 = smov [#allocation3]   ;;  %s855_s7 = sshll.u32 %s1193_s16, 5 }
  0x2d   : > { %s172_s4 = sshll.u32 %s1203_s30, 4  ;;  %p903_p1 = pneg %p1334_p13  ;;  %s1338_s4 = int_to_ptr.vmem [resolvable:$true] %s172_s4 }
  0x2e   : > { %s220_s10 = scalar_lea.hbm %s1479_s2, %s855_s7  ;;  %s214_s11 = scalar_lea.vmem [#allocation8], %s801_s28 }
  0x2f   : > { %s222_s22 = sshll.u32 %s214_s11, 4  ;;  %p1348_p0 = pnand %p903_p1, %p1484_p3  ;;  %s223_s22 = int_to_ptr.vmem [resolvable:$true] %s222_s22 }
  0x30   : > { %s1072_s19 = scalar_lea.vmem %s223_s22, 32  ;;  %s1204_s30 = smov [#allocation8]  }
  0x31   : > { %p1073_p2 = scmp.ne.s32.totalorder %s223_s22, %s1072_s19  ;;  %s1077_s20 = sshll.u32 %s1204_s30, 4  ;;  %s1078_s20 = int_to_ptr.vmem [resolvable:$false] %s1077_s20 }
  0x32   : > { %s1079_s1 = scalar_lea.vmem %s1078_s20, 64  ;;  %p1080_p9 = scmp.lt.s32.totalorder %s223_s22, %s1078_s20 }
  0x33   : > { %p1075_p4 = pnand %p1073_p2, %p1033_p7  ;;  %p1081_p12 = scmp.lt.s32.totalorder %s1079_s1, %s1072_s19 }
  0x35   : > { %p1076_p5 = pneg %p1075_p4  ;;  %p1082_p11 = por %p1081_p12, %p1080_p9 }
  0x37   : > { %p1083_p10 = pnand %p1082_p11, %p1076_p5 }
  0x39   : > { %1086 = shalt.err (!%p1083_p10)
}
  0x3a   : > { %913 = dma.hbm_to_vmem [thread:$0]  (!%p1289_p6), %s220_s10, 32, %s223_s22, %s1293_s6  }
  0x3b   : > { %p1089_p7 = pneg %p1348_p0  ;;  %s1098_s28 = scalar_lea.vmem %s1338_s4, 512 }
  0x3c   : > { %p1099_p1 = scmp.ne.s32.totalorder %s1338_s4, %s1098_s28  ;;  %p1106_p3 = scmp.lt.s32.totalorder %s1338_s4, %s1338_s4 }
  0x3d   : > { %p1107_p8 = scmp.lt.s32.totalorder %s1098_s28, %s1098_s28 }
  0x3e   : > { %p1101_p2 = pnand %p1099_p1, %p1089_p7 }
  0x3f   : > { %p1108_p9 = por %p1107_p8, %p1106_p3 }
  0x40   : > { %p1102_p4 = pneg %p1101_p2 }
  0x42   : > { %p1109_p11 = pnand %p1108_p9, %p1102_p4 }
  0x44   : > { %1112 = shalt.err (!%p1109_p11)
}
  0x45   : > { %s1495_s1 = smov 8   ;;  %s1496_s5 = smov 128  }
  0x46   : > { %906 = dma.hbm_to_vmem [thread:$0]  (!%p1348_p0), %s1477_s0, 512, %s1338_s4, [#allocation4], %s1496_s5, %s1496_s5, %s1495_s1  }
  0x47   : > { %231 = sbr.rel (%p1334_p13) target bundleno = 365 (0x16d), region = 32  ;;  %p1497_p6 = scmp.eq.s32.totalorder (!%p1334_p13), %s1306_s21, 0 }
  0x4c   : > { %1164 = dma.done.wait (%p1497_p6), [#allocation4], 512   ;;  %p1498_p3 = pmov %p1497_p6 }
  0x4d   : > { %s237_s20 = sand.u32 1, %s1306_s21   ;;  %s1381_s7 = sand.u32 1, %s1181_s13  }
  0x4e   : > { %1166 = vsyncadd (%p1498_p3), [#allocation4], 4294966784  ;;  %s806_s8 = sshll.u32 %s1381_s7, 8  ;;  %s238_s9 = scalar_lea.sflag [#allocation7], %s237_s20 }
  0x4f   : > { %s1384_s10 = scalar_lea.vmem [#allocation6], %s806_s8  ;;  %p1499_p8 = scmp.ne.s32.totalorder %s1490_s25, 0 }
  0x51   : > { %1168 = dma.done.wait (%p1499_p8), %s238_s9, 4128  }
  0x52   : > { %1170 = vsyncadd (%p1499_p8), %s238_s9, 4294963168  ;;  %v977_v0 = vld [vmem:[%s1384_s10 + $0x74] ss:$8 sps:$4 sm:$0xff]   ;;  %v979_v1 = vld [vmem:[%s1384_s10 + $0x70] ss:$8 sps:$4 sm:$0xff]   ;;  %v603_v36 = vlaneseq  ;;  %s807_s21 = sshll.u32 %s1381_s7, 1 }
  0x53   : > { %521 = vmatprep.subr.bf16.mxu0 %v977_v0  ;;  %861 = vmatprep.subr.bf16.mxu1 %v977_v0  ;;  %v980_v2 = vld [vmem:[%s1384_s10 + $0x64] ss:$8 sps:$4 sm:$0xff]   ;;  %v982_v3 = vld [vmem:[%s1384_s10 + $0x60] ss:$8 sps:$4 sm:$0xff]   ;;  %v983_v4 = vld [vmem:[%s1384_s10 + $0x54] ss:$8 sps:$4 sm:$0xff]  }
  0x54   : > { %522 = vmatpush1.bf16.msra.mxu0 %v979_v1  ;;  %877 = vmatpush1.bf16.msra.mxu1 %v979_v1  ;;  %v985_v5 = vld [vmem:[%s1384_s10 + $0x50] ss:$8 sps:$4 sm:$0xff]   ;;  %v986_v6 = vld [vmem:[%s1384_s10 + $0x44] ss:$8 sps:$4 sm:$0xff]   ;;  %v988_v7 = vld [vmem:[%s1384_s10 + $0x40] ss:$8 sps:$4 sm:$0xff]  }
  0x55   : > { %523 = vmatprep.subr.bf16.mxu0 %v980_v2  ;;  %862 = vmatprep.subr.bf16.mxu1 %v980_v2  ;;  %v989_v8 = vld [vmem:[%s1384_s10 + $0x34] ss:$8 sps:$4 sm:$0xff]   ;;  %v991_v9 = vld [vmem:[%s1384_s10 + $0x30] ss:$8 sps:$4 sm:$0xff]   ;;  %v992_v10 = vld [vmem:[%s1384_s10 + $0x24] ss:$8 sps:$4 sm:$0xff]  }
  0x56   : > { %v994_v11 = vld [vmem:[%s1384_s10 + $0x20] ss:$8 sps:$4 sm:$0xff]   ;;  %v995_v12 = vld [vmem:[%s1384_s10 + $0x14] ss:$8 sps:$4 sm:$0xff]   ;;  %v1027_v13 = vld [vmem:[#allocation3 + $0x4] ss:$8 sps:$4 sm:$0xff]  }
  0x57   : > { %v997_v14 = vld [vmem:[%s1384_s10 + $0x10] ss:$8 sps:$4 sm:$0xff]   ;;  %v1030_v15 = vld [vmem:[#allocation3 + $0x14] ss:$8 sps:$4 sm:$0xff]   ;;  %v998_v16 = vld [vmem:[%s1384_s10 + $0x4] ss:$8 sps:$4 sm:$0xff]   ;;  %553 = vmatprep.mubr.bf16.mxu0 %v1027_v13 }
  0x58   : > { %524 = vmatpush1.bf16.msra.mxu0 %v982_v3  ;;  %878 = vmatpush1.bf16.msra.mxu1 %v982_v3  ;;  %v1000_v17 = vld [vmem:[%s1384_s10] ss:$8 sps:$4 sm:$0xff]   ;;  %v1001_v18 = vld [vmem:[%s1384_s10 + $0xf4] ss:$8 sps:$4 sm:$0xff]   ;;  %v1003_v19 = vld [vmem:[%s1384_s10 + $0xf0] ss:$8 sps:$4 sm:$0xff]  }
  0x59   : > { %525 = vmatprep.subr.bf16.mxu0 %v983_v4  ;;  %863 = vmatprep.subr.bf16.mxu1 %v983_v4  ;;  %v1004_v20 = vld [vmem:[%s1384_s10 + $0xe4] ss:$8 sps:$4 sm:$0xff]   ;;  %v1006_v21 = vld [vmem:[%s1384_s10 + $0xe0] ss:$8 sps:$4 sm:$0xff]   ;;  %v1007_v22 = vld [vmem:[%s1384_s10 + $0xd4] ss:$8 sps:$4 sm:$0xff]  }
  0x5a   : > { %563 = vmatprep.mubr.bf16.mxu1 %v1030_v15  ;;  %v1009_v23 = vld [vmem:[%s1384_s10 + $0xd0] ss:$8 sps:$4 sm:$0xff]   ;;  %v1010_v24 = vld [vmem:[%s1384_s10 + $0xc4] ss:$8 sps:$4 sm:$0xff]   ;;  %v1012_v25 = vld [vmem:[%s1384_s10 + $0xc0] ss:$8 sps:$4 sm:$0xff]  }
  0x5b   : > { %v1013_v26 = vld [vmem:[%s1384_s10 + $0xb4] ss:$8 sps:$4 sm:$0xff]   ;;  %v1015_v27 = vld [vmem:[%s1384_s10 + $0xb0] ss:$8 sps:$4 sm:$0xff]   ;;  %v1016_v28 = vld [vmem:[%s1384_s10 + $0xa4] ss:$8 sps:$4 sm:$0xff]  }
  0x5c   : > { %526 = vmatpush1.bf16.msra.mxu0 %v985_v5  ;;  %879 = vmatpush1.bf16.msra.mxu1 %v985_v5  ;;  %v1018_v29 = vld [vmem:[%s1384_s10 + $0xa0] ss:$8 sps:$4 sm:$0xff]   ;;  %v1019_v30 = vld [vmem:[%s1384_s10 + $0x94] ss:$8 sps:$4 sm:$0xff]   ;;  %v1021_v31 = vld [vmem:[%s1384_s10 + $0x90] ss:$8 sps:$4 sm:$0xff]  }
  0x5d   : > { %527 = vmatprep.subr.bf16.mxu0 %v986_v6  ;;  %864 = vmatprep.subr.bf16.mxu1 %v986_v6  ;;  %v1022_v32 = vld [vmem:[%s1384_s10 + $0x84] ss:$8 sps:$4 sm:$0xff]   ;;  %v1024_v33 = vld [vmem:[%s1384_s10 + $0x80] ss:$8 sps:$4 sm:$0xff]   ;;  %v1028_v35 = vld [vmem:[#allocation3 + $0x10] ss:$8 sps:$4 sm:$0xff]  }
  0x5e   : > { %v1025_v34 = vld [vmem:[#allocation3] ss:$8 sps:$4 sm:$0xff]   ;;  %v604_v37 = vshrl.u32 %v603_v36, 7  ;;  %s250_s25 = scalar_lea.vmem [#allocation8], %s807_s21  ;;  %s808_s29 = sshll.u32 %s1381_s7, 5 }
  0x5f   : > { %v601_v40 = vld [vmem:[%s250_s25] sm:$0x3]  ;;  %s277_s4 = scalar_lea.vmem [#allocation9], %s808_s29  ;;  %s860_s22 = sshll.u32 %s1189_s15, 7 }
  0x60   : > { %528 = vmatpush1.bf16.msra.mxu0 %v988_v7  ;;  %880 = vmatpush1.bf16.msra.mxu1 %v988_v7  ;;  %v605_v38 = vsub.s32 0, %v604_v37  ;;  %v609_v39 = vsub.s32 1, %v604_v37  ;;  %s666_s11 = sshll.u32 %s277_s4, 4  ;;  %s1430_s28 = scalar_lea.hbm %s1480_s3, %s860_s22  ;;  %s1425_s11 = int_to_ptr.vmem [resolvable:$true] %s666_s11 }
  0x61   : > { %529 = vmatprep.subr.bf16.mxu0 %v989_v8  ;;  %865 = vmatprep.subr.bf16.mxu1 %v989_v8  ;;  %s650_s15 = scalar_lea.sflag [#allocation5], %s1381_s7  ;;  %s1113_s1 = scalar_lea.vmem %s1425_s11, 512 }
  0x62   : > { %v606_v41 = vrot.slane %v601_v40, %v605_v38  ;;  %v610_v42 = vrot.slane %v601_v40, %v609_v39  ;;  %p1114_p10 = scmp.ne.s32.totalorder %s1425_s11, %s1113_s1  ;;  %p1500_p13 = scmp.ne.s32.totalorder %s1491_s26, 0 }
  0x63   : > { %s1205_s5 = smov [#allocation9]  }
  0x64   : > { %530 = vmatpush1.bf16.msra.mxu0 %v991_v9  ;;  %881 = vmatpush1.bf16.msra.mxu1 %v991_v9  ;;  %p1115_p0 = pnand %p1114_p10, %p1500_p13  ;;  %s1117_s19 = sshll.u32 %s1205_s5, 4  ;;  %s1118_s19 = int_to_ptr.vmem [resolvable:$false] %s1117_s19 }
  0x65   : > { %531 = vmatprep.subr.bf16.mxu0 %v992_v10  ;;  %866 = vmatprep.subr.bf16.mxu1 %v992_v10  ;;  %s1119_s6 = scalar_lea.vmem %s1118_s19, 1024  ;;  %p1120_p12 = scmp.lt.s32.totalorder %s1425_s11, %s1118_s19 }
  0x66   : > { %p1116_p5 = pneg %p1115_p0  ;;  %p1121_p7 = scmp.lt.s32.totalorder %s1119_s6, %s1113_s1 }
  0x68   : > { %532 = vmatpush1.bf16.msra.mxu0 %v994_v11  ;;  %882 = vmatpush1.bf16.msra.mxu1 %v994_v11  ;;  %p1122_p1 = por %p1121_p7, %p1120_p12 }
  0x69   : > { %533 = vmatprep.subr.bf16.mxu0 %v995_v12  ;;  %867 = vmatprep.subr.bf16.mxu1 %v995_v12 }
  0x6a   : > { %p1123_p2 = pnand %p1122_p1, %p1116_p5 }
  0x6c   : > { %534 = vmatpush1.bf16.msra.mxu0 %v997_v14  ;;  %883 = vmatpush1.bf16.msra.mxu1 %v997_v14 }
  0x6d   : > { %535 = vmatprep.subr.bf16.mxu0 %v998_v16  ;;  %868 = vmatprep.subr.bf16.mxu1 %v998_v16 }
  0x70   : > { %536 = vmatpush1.bf16.msra.mxu0 %v1000_v17  ;;  %884 = vmatpush1.bf16.msra.mxu1 %v1000_v17 }
  0x71   : > { %537 = vmatprep.subr.bf16.mxu0 %v1001_v18  ;;  %869 = vmatprep.subr.bf16.mxu1 %v1001_v18 }
  0x74   : > { %538 = vmatpush2.bf16.msra.mxu0 %v1003_v19  ;;  %885 = vmatpush2.bf16.msra.mxu1 %v1003_v19 }
  0x75   : > { %539 = vmatprep.subr.bf16.mxu0 %v1004_v20  ;;  %870 = vmatprep.subr.bf16.mxu1 %v1004_v20 }
  0x78   : > { %540 = vmatpush2.bf16.msra.mxu0 %v1006_v21  ;;  %886 = vmatpush2.bf16.msra.mxu1 %v1006_v21 }
  0x79   : > { %541 = vmatprep.subr.bf16.mxu0 %v1007_v22  ;;  %871 = vmatprep.subr.bf16.mxu1 %v1007_v22 }
  0x7c   : > { %542 = vmatpush2.bf16.msra.mxu0 %v1009_v23  ;;  %887 = vmatpush2.bf16.msra.mxu1 %v1009_v23 }
  0x7d   : > { %543 = vmatprep.subr.bf16.mxu0 %v1010_v24  ;;  %872 = vmatprep.subr.bf16.mxu1 %v1010_v24 }
  0x80   : > { %544 = vmatpush2.bf16.msra.mxu0 %v1012_v25  ;;  %888 = vmatpush2.bf16.msra.mxu1 %v1012_v25 }
  0x81   : > { %545 = vmatprep.subr.bf16.mxu0 %v1013_v26  ;;  %873 = vmatprep.subr.bf16.mxu1 %v1013_v26 }
  0x84   : > { %546 = vmatpush2.bf16.msra.mxu0 %v1015_v27  ;;  %889 = vmatpush2.bf16.msra.mxu1 %v1015_v27 }
  0x85   : > { %547 = vmatprep.subr.bf16.mxu0 %v1016_v28  ;;  %874 = vmatprep.subr.bf16.mxu1 %v1016_v28 }
  0x88   : > { %548 = vmatpush2.bf16.msra.mxu0 %v1018_v29  ;;  %890 = vmatpush2.bf16.msra.mxu1 %v1018_v29 }
  0x89   : > { %549 = vmatprep.subr.bf16.mxu0 %v1019_v30  ;;  %875 = vmatprep.subr.bf16.mxu1 %v1019_v30 }
  0x8c   : > { %550 = vmatpush2.bf16.msra.mxu0 %v1021_v31  ;;  %891 = vmatpush2.bf16.msra.mxu1 %v1021_v31 }
  0x8d   : > { %551 = vmatprep.subr.bf16.mxu0 %v1022_v32  ;;  %876 = vmatprep.subr.bf16.mxu1 %v1022_v32 }
  0x90   : > { %552 = vmatpush2.bf16.msra.mxu0 %v1024_v33  ;;  %892 = vmatpush2.bf16.msra.mxu1 %v1024_v33 }
  0x93   : > { %554 = vmatmul.mubr.bf16.vlgmr.msra.gmra.mxu0 %v1025_v34  ;;  %564 = vmatmul.mubr.bf16.vlgmr.msra.gmra.mxu1 %v1028_v35 }
 0x153   : > { %v555_v43 = vpop.f32.mrf.mxu0  ;;  %v565_v44 = vpop.f32.mrf.mxu1 }
 0x154   : > { %v613_v47 = vadd.f32 %v606_v41, %v555_v43  ;;  %v617_v48 = vadd.f32 %v606_v41, %v565_v44 }
 0x155   : > { %v557_v45 = vpop.f32.mrf.mxu0  ;;  %v567_v46 = vpop.f32.mrf.mxu1 }
 0x156   : > { %v614_v49 = vadd.f32 %v610_v42, %v557_v45  ;;  %v618_v50 = vadd.f32 %v610_v42, %v567_v46 }
 0x157   : > { %v559_v51 = vpop.f32.mrf.mxu0  ;;  %v569_v52 = vpop.f32.mrf.mxu1 }
 0x158   : > { %v856_v53 = vpack.c.bf16 %v614_v49, %v613_v47  ;;  %v858_v54 = vpack.c.bf16 %v618_v50, %v617_v48  ;;  %v615_v57 = vadd.f32 %v606_v41, %v559_v51  ;;  %v619_v58 = vadd.f32 %v606_v41, %v569_v52 }
 0x159   : > { %v561_v55 = vpop.f32.mrf.mxu0  ;;  %v571_v56 = vpop.f32.mrf.mxu1 }
 0x15a   : > { %645 = vst [vmem:[%s277_s4] sm:$0xff] %v856_v53  ;;  %647 = vst [vmem:[%s277_s4 + $0x10] sm:$0xff] %v858_v54  ;;  %v616_v59 = vadd.f32 %v610_v42, %v561_v55  ;;  %v620_v60 = vadd.f32 %v610_v42, %v571_v56 }
 0x15c   : > { %v857_v61 = vpack.c.bf16 %v616_v59, %v615_v57  ;;  %v859_v62 = vpack.c.bf16 %v620_v60, %v619_v58 }
 0x15e   : > { %646 = vst [vmem:[%s277_s4 + $0x8] sm:$0xff] %v857_v61  ;;  %648 = vst [vmem:[%s277_s4 + $0x18] sm:$0xff] %v859_v62 }
 0x15f   : > { %1126 = shalt.err (!%p1123_p2)
}
 0x160   : > { %s1127_s20 = scalar_lea.hbm %s1430_s28, 512  ;;  %s1131_s10 = scalar_lea.hbm %s1480_s3, 1536 }
 0x161   : > { %p1128_p4 = scmp.ne.s32.totalorder %s1430_s28, %s1127_s20  ;;  %p1132_p6 = scmp.lt.s32.totalorder %s1430_s28, %s1480_s3 }
 0x162   : > { %p1133_p3 = scmp.lt.s32.totalorder %s1131_s10, %s1127_s20 }
 0x163   : > { %p1129_p9 = pnand %p1128_p4, %p1500_p13 }
 0x164   : > { %p1134_p8 = por %p1133_p3, %p1132_p6 }
 0x165   : > { %p1130_p11 = pneg %p1129_p9 }
 0x167   : > { %p1135_p10 = pnand %p1134_p8, %p1130_p11 }
 0x169   : > { %1138 = shalt.err (!%p1135_p10)
}
 0x16a   : > { %s1206_s29 = smov 128   ;;  %s1207_s4 = smov 384  }
 0x16b   : > { %s1208_s22 = smov 8  }
 0x16c   : > { %901 = dma.vmem_to_hbm [thread:$0]  (%p1500_p13), %s1425_s11, 512, %s1430_s28, %s650_s15, %s1206_s29, %s1207_s4, %s1208_s22  }
 0x16d PF: > { %p921_p0 = scmp.ge.s32.totalorder %s1197_s17, 2  ;;  %s681_s23 = sand.u32 1, %s1177_s12  }
 0x16e   : > { %p1501_p5 = scmp.ne.s32.totalorder %s1492_s27, 0  ;;  %s682_s30 = scalar_lea.sflag [#allocation5], %s681_s23 }
 0x170   : > { %p915_p12 = pnand %p921_p0, %p1501_p5 }
 0x172   : > { %p916_p7 = pneg %p915_p12 }
 0x174   : > { %1172 = dma.done.wait (%p916_p7), %s682_s30, 512  }
 0x175   : > { %1174 = vsyncadd (%p916_p7), %s682_s30, 4294966784  ;;  %s20_s17 = sadd.s32 1, %s1197_s17   ;;  %s1502_s12 = smov %s1181_s13 }
 0x176   : > { %p17_p1 = scmp.ge.s32.totalorder %s20_s17, 5   ;;  %s1503_s13 = smov %s1185_s14 }
 0x177   : > { %s1504_s14 = smov %s1279_s24  ;;  %s1505_s15 = smov %s1193_s16 }
 0x178   : > { %s1506_s16 = smov %s1508_s18  ;;  %19 = sbr.rel (!%p17_p1) target bundleno = 9 (0x9), region = 102 }
 0x17d   :  { %687 = vsyncpa [#allocation4], 1 }
 0x17e   :  { %689 = vsyncpa [#allocation4 + $0x1], 1 }
 0x17f   :  { %690 = vsyncpa [#allocation7], 1 }
 0x180   :  { %692 = vsyncpa [#allocation7 + $0x1], 1 }
 0x181   :  { %693 = vsyncpa [#allocation5], 1 }
 0x182   :  { %695 = vsyncpa [#allocation5 + $0x1], 1 }

</bundles_post_ra>
